<compile_context>
chip_gen: v5e
topology: v5e:2x2
jax: 0.10.0
libtpu: 0.0.40
codegen_flags: <defaults>
</compile_context>

<pallas_src>
import functools

import jax
import jax.numpy as jnp
from jax.experimental import pallas as pl
from jax.experimental.pallas import tpu as pltpu

LANE = 128
SUBLANE = 8


def _ceil_div(a, b):
    return -(-a // b)


def _pow(x, gamma):
    """(1-pt)^gamma with integer-gamma specialization (default gamma=2 -> 1 mul)."""
    g = float(gamma)
    if g == float(int(g)) and 0 <= int(g) <= 16:
        n = int(g)
        if n == 0:
            return jnp.ones_like(x)
        r = x
        for _ in range(n - 1):
            r = r * x
        return r
    # Non-integer gamma: explicit exp/log form (x >= 0 here by construction).
    safe = jnp.maximum(x, jnp.float32(1e-30))
    return jnp.where(x > 0.0, jnp.exp(jnp.float32(g) * jnp.log(safe)), 0.0)


def _focal_kernel(x_ref, t_ref, out_ref, acc_ref, *,
                  alpha, gamma, num_classes, tr, hw, has_tail, split, steps_per):
    # grid = (N*split, steps_per); axis 0 "parallel", axis 1 is the reduction.
    j = pl.program_id(1)

    @pl.when(j == 0)
    def _():
        acc_ref[...] = jnp.zeros_like(acc_ref)

    tgt = t_ref[...]                                   # (tr, LANE) int32 class ids

    if has_tail:
        # Mask covering: spatial LANE-padding, partial (clamped) row blocks, and
        # duplicated blocks from the batch-1 spatial split. Must stay a select.
        if split > 1:
            g = (pl.program_id(0) % split) * steps_per + j
        else:
            g = j
        row = jax.lax.broadcasted_iota(jnp.int32, (tr, LANE), 0)
        col = jax.lax.broadcasted_iota(jnp.int32, (tr, LANE), 1)
        valid = (g * tr + row) * LANE + col < hw
    else:
        valid = None

    def contrib(c):
        x = x_ref[c].astype(jnp.float32)               # (tr, LANE)
        m = tgt == c                                   # one-hot as a bool mask
        e = jnp.exp(-jnp.abs(x))                       # EUP #1
        log1pe = jnp.log1p(e)                          # EUP #2
        # numerically-stable BCE-with-logits (== F.binary_cross_entropy_with_logits)
        bce = jnp.maximum(x, 0.0) - jnp.where(m, x, 0.0) + log1pe
        # pt = exp(-bce) computed algebraically (drops the third transcendental):
        #   sigmoid(x) = 1/(1+e) if x>=0 else e/(1+e); pt = sig if m else 1-sig
        inv = 1.0 / (1.0 + e)
        sig = jnp.where(x >= 0.0, inv, e * inv)
        pt = jnp.where(m, sig, 1.0 - sig)
        at = jnp.where(m, 1.0 - alpha, alpha)
        f = at * _pow(1.0 - pt, gamma) * bce
        if valid is not None:
            f = jnp.where(valid, f, 0.0)               # select, never multiply
        return f

    if num_classes <= 8:
        # Small C: static unroll, accumulate straight into the VMEM accumulator.
        for c in range(num_classes):
            acc_ref[...] += contrib(c)
    else:
        # Large C: bounded-unroll loop keeps code size / vreg pressure sane.
        def body(c, carry):
            acc_ref[...] += contrib(c)
            return carry
        jax.lax.fori_loop(0, num_classes, body, 0, unroll=4)

    @pl.when(j == pl.num_programs(1) - 1)
    def _():
        # Fold the (tr,128) accumulator into an (8,128) per-slot partial sum.
        out_ref[...] = acc_ref[...].reshape(tr // SUBLANE, SUBLANE, LANE).sum(axis=0)


def weighted_focal_loss(inputs, targets, alpha=0.25, gamma=2.0, *, block_bytes=None):
    """inputs: [N, C, H, W] logits; targets: [N, H, W] or [N, 1, H, W] int class ids."""
    N, C, H, W = inputs.shape
    hw = H * W
    total = N * C * hw

    itemsize = jnp.dtype(inputs.dtype).itemsize
    align = max(SUBLANE, {4: 8, 2: 16, 1: 32}.get(itemsize, 8))   # dtype-aware sublanes

    # ---- generation-aware VMEM budgets (v5e/v6e: 128 MiB, v7x: 64 MiB) ----
    try:
        vmem_cap = int(pltpu.get_tpu_info().vmem_capacity_bytes)
    except Exception:
        vmem_cap = 64 * 1024 * 1024                    # conservative fallback
    logits_budget = block_bytes if block_bytes else min(8 << 20, vmem_cap // 10)
    vmem_limit = max(32 << 20, min(vmem_cap - (16 << 20), 100 << 20))

    # ---- spatial layout: flat -> (rows, 128); pad only when H*W is ragged ----
    chunk = LANE * align
    hwp = _ceil_div(hw, chunk) * chunk
    x3 = inputs.reshape(N, C, hw)
    t2 = targets.reshape(N, hw).astype(jnp.int32)      # handles [N,H,W] and [N,1,H,W]
    if hwp != hw:
        # Only genuinely ragged H*W copies; row-tile raggedness never pads.
        x3 = jnp.pad(x3, ((0, 0), (0, 0), (0, hwp - hw)))
        t2 = jnp.pad(t2, ((0, 0), (0, hwp - hw)))
    hr = hwp // LANE                                   # multiple of `align`
    x4 = x3.reshape(N, C, hr, LANE)
    t3 = t2.reshape(N, hr, LANE)

    bytes_per_row = C * LANE * itemsize
    tr = max(align, (logits_budget // bytes_per_row) // align * align)
    tr = min(tr, hr)                                   # multiple of align, >= 8
    steps = _ceil_div(hr, tr)                          # row-blocks per image

    # batch-1: split the spatial reduction into 2 parallel slots (v7x megacore).
    split = 2 if (N == 1 and steps >= 2) else 1
    steps_per = _ceil_div(steps, split)
    has_tail = (split * steps_per * tr * LANE) != hw

    if split == 1:
        x_map = lambda n, j: (n, 0, j, 0)
        t_map = lambda n, j: (n, j, 0)
    else:
        def x_map(i, j):
            g = (i % split) * steps_per + j
            return (i // split, 0, jnp.minimum(g, steps - 1), 0)

        def t_map(i, j):
            g = (i % split) * steps_per + j
            return (i // split, jnp.minimum(g, steps - 1), 0)

    kernel = functools.partial(
        _focal_kernel, alpha=float(alpha), gamma=float(gamma),
        num_classes=C, tr=tr, hw=hw, has_tail=has_tail,
        split=split, steps_per=steps_per)

    cost = pl.CostEstimate(
        flops=16 * total,
        transcendentals=2 * total,
        bytes_accessed=N * C * hwp * itemsize + N * hwp * 4
                       + N * split * SUBLANE * LANE * 4)

    out = pl.pallas_call(
        kernel,
        out_shape=jax.ShapeDtypeStruct((N * split, SUBLANE, LANE), jnp.float32),
        grid_spec=pltpu.PrefetchScalarGridSpec(
            num_scalar_prefetch=0,
            grid=(N * split, steps_per),
            in_specs=[
                # logits: all channels of one row-block of one image (kept in
                # their native dtype; compute upcasts to f32 in-kernel).
                pl.BlockSpec((None, C, tr, LANE), x_map),
                # int targets: one row-block, shared by all channels.
                pl.BlockSpec((None, tr, LANE), t_map),
            ],
            out_specs=pl.BlockSpec((None, SUBLANE, LANE), lambda i, j: (i, 0, 0)),
            scratch_shapes=[pltpu.VMEM((tr, LANE), jnp.float32)],
        ),
        compiler_params=pltpu.CompilerParams(
            dimension_semantics=("parallel", "arbitrary"),
            vmem_limit_bytes=int(vmem_limit)),
        cost_estimate=cost,
    )(x4, t3)

    # Tiny final reduction (N*split*8*128 partials) + mean in plain JAX.
    return jnp.sum(out) / jnp.float32(total)


def _reference(inputs, targets, alpha=0.25, gamma=2.0):
    num_classes = inputs.shape[1]
    if targets.ndim < 4:
        targets = targets[:, None, :, :]
    t = (targets == jnp.arange(num_classes, dtype=targets.dtype)[None, :, None, None]
         ).astype(jnp.float32)
    x = inputs.astype(jnp.float32)
    bce = jnp.maximum(x, 0.0) - x * t + jnp.log1p(jnp.exp(-jnp.abs(x)))
    pt = jnp.exp(-bce)
    at = alpha * (1.0 - t) + (1.0 - alpha) * t
    return jnp.mean(at * (1.0 - pt) ** gamma * bce)


if __name__ == "__main__":
    key = jax.random.PRNGKey(0)
    k1, k2, k3, k4, k5, k6 = jax.random.split(key, 6)

    # Test 1: default module shape/dtype; static channel unroll; masked LANE pad.
    N, C, H, W = 2, 4, 16, 16
    x_a = jax.random.normal(k1, (N, C, H, W), dtype=jnp.float32)
    t_a = jax.random.randint(k2, (N, H, W), 0, C, dtype=jnp.int32)
    got = jax.block_until_ready(weighted_focal_loss(x_a, t_a, alpha=0.25, gamma=2.0))
    ref = _reference(x_a, t_a, alpha=0.25, gamma=2.0)
    assert jnp.allclose(got, ref, rtol=1e-5, atol=1e-6), (got, ref)

    # Test 2: batch-1 spatial split (v7x 2-TC path), large-C fori_loop channel
    # loop, and un-padded partial row blocks (forced small tile budget).
    N, C, H, W = 1, 12, 64, 80
    x_b = jax.random.normal(k3, (N, C, H, W), dtype=jnp.float32)
    t_b = jax.random.randint(k4, (N, H, W), 0, C, dtype=jnp.int32)
    got = jax.block_until_ready(
        weighted_focal_loss(x_b, t_b, alpha=0.4, gamma=2.0,
                            block_bytes=C * LANE * 4 * 16))
    ref = _reference(x_b, t_b, alpha=0.4, gamma=2.0)
    assert jnp.allclose(got, ref, rtol=1e-5, atol=1e-6), (got, ref)

    # Test 3: bf16 logits streamed in bf16 (dtype-aware 16-row sublane alignment).
    N, C, H, W = 2, 3, 16, 16
    x_c = jax.random.normal(k5, (N, C, H, W), dtype=jnp.bfloat16)
    t_c = jax.random.randint(k6, (N, H, W), 0, C, dtype=jnp.int32)
    got = jax.block_until_ready(weighted_focal_loss(x_c, t_c, alpha=0.25, gamma=2.0))
    ref = _reference(x_c, t_c, alpha=0.25, gamma=2.0)
    assert jnp.allclose(got, ref, rtol=1e-5, atol=1e-6), (got, ref)

    print("KERNEL_OK")
</pallas_src>

<mosaic_0001>
module attributes {stable_mosaic.version = 11 : i64} {
  func.func @_focal_kernel(%arg0: i32, %arg1: i32, %arg2: memref<1x4x8x128xf32, #tpu.memory_space<vmem>>, %arg3: memref<1x8x128xi32, #tpu.memory_space<vmem>>, %arg4: memref<1x8x128xf32, #tpu.memory_space<vmem>>, %arg5: memref<8x128xf32, #tpu.memory_space<vmem>>) attributes {dimension_semantics = [#tpu.dimension_semantics<parallel>, #tpu.dimension_semantics<arbitrary>], iteration_bounds = array<i64: 2, 1>, scalar_prefetch = 0 : i64, scratch_operands = 1 : i64, tpu.core_type = #tpu.core_type<tc>, window_params = [{transform_indices = @transform_0, window_bounds = array<i64: 1, 4, 8, 128>}, {transform_indices = @transform_1, window_bounds = array<i64: 1, 8, 128>}, {transform_indices = @transform_2, window_bounds = array<i64: 1, 8, 128>}]} {
    %c0_i32 = arith.constant 0 : i32
    %0 = arith.cmpi eq, %arg1, %c0_i32 : i32
    %1 = arith.extui %0 : i1 to i32
    %c0_i32_0 = arith.constant 0 : i32
    %2 = arith.cmpi ne, %1, %c0_i32_0 : i32
    scf.if %2 {
      %cst_78 = arith.constant 0.000000e+00 : f32
      %174 = vector.broadcast %cst_78 : f32 to vector<8x128xf32>
      %c0_79 = arith.constant 0 : index
      %c0_80 = arith.constant 0 : index
      %175 = vector.load %arg5[%c0_79, %c0_80] : memref<8x128xf32, #tpu.memory_space<vmem>>, vector<8x128xf32>
      tpu.vector_store %arg5[%c0_79, %c0_80], %174 {strides = array<i32>} : memref<8x128xf32, #tpu.memory_space<vmem>>, vector<8x128xf32>,
    } else {
    }
    %c0 = arith.constant 0 : index
    %c0_1 = arith.constant 0 : index
    %c0_2 = arith.constant 0 : index
    %3 = vector.load %arg3[%c0, %c0_1, %c0_2] : memref<1x8x128xi32, #tpu.memory_space<vmem>>, vector<1x8x128xi32>
    %4 = vector.shape_cast %3 : vector<1x8x128xi32> to vector<8x128xi32>
    %5 = tpu.iota {dimensions = array<i32: 0>} : vector<8x128xi32>
    %6 = tpu.iota {dimensions = array<i32: 1>} : vector<8x128xi32>
    %c8_i32 = arith.constant 8 : i32
    %7 = arith.muli %arg1, %c8_i32 : i32
    %8 = vector.broadcast %7 : i32 to vector<8x128xi32>
    %9 = arith.addi %8, %5 : vector<8x128xi32>
    %c128_i32 = arith.constant 128 : i32
    %10 = vector.broadcast %c128_i32 : i32 to vector<8x128xi32>
    %11 = arith.muli %9, %10 : vector<8x128xi32>
    %12 = arith.addi %11, %6 : vector<8x128xi32>
    %c256_i32 = arith.constant 256 : i32
    %13 = vector.broadcast %c256_i32 : i32 to vector<8x128xi32>
    %14 = arith.cmpi slt, %12, %13 : vector<8x128xi32>
    %c0_3 = arith.constant 0 : index
    %c0_4 = arith.constant 0 : index
    %15 = vector.load %arg5[%c0_3, %c0_4] : memref<8x128xf32, #tpu.memory_space<vmem>>, vector<8x128xf32>
    %c0_5 = arith.constant 0 : index
    %c0_6 = arith.constant 0 : index
    %c0_7 = arith.constant 0 : index
    %c0_8 = arith.constant 0 : index
    %16 = vector.load %arg2[%c0_5, %c0_6, %c0_7, %c0_8] : memref<1x4x8x128xf32, #tpu.memory_space<vmem>>, vector<1x1x8x128xf32>
    %17 = vector.shape_cast %16 : vector<1x1x8x128xf32> to vector<8x128xf32>
    %c0_i32_9 = arith.constant 0 : i32
    %18 = vector.broadcast %c0_i32_9 : i32 to vector<8x128xi32>
    %19 = arith.cmpi eq, %4, %18 : vector<8x128xi32>
    %20 = math.absf %17 : vector<8x128xf32>
    %cst = arith.constant 0.000000e+00 : f32
    %21 = vector.broadcast %cst : f32 to vector<8x128xf32>
    %22 = arith.subf %21, %20 : vector<8x128xf32>
    %23 = math.exp %22 : vector<8x128xf32>
    %24 = math.log1p %23 : vector<8x128xf32>
    %cst_10 = arith.constant 0.000000e+00 : f32
    %25 = vector.broadcast %cst_10 : f32 to vector<8x128xf32>
    %26 = arith.maximumf %17, %25 : vector<8x128xf32>
    %cst_11 = arith.constant 0.000000e+00 : f32
    %27 = vector.broadcast %cst_11 : f32 to vector<8x128xf32>
    %28 = arith.select %19, %17, %27 : vector<8x128xi1>, vector<8x128xf32>
    %29 = arith.subf %26, %28 : vector<8x128xf32>
    %30 = arith.addf %29, %24 : vector<8x128xf32>
    %cst_12 = arith.constant 1.000000e+00 : f32
    %31 = vector.broadcast %cst_12 : f32 to vector<8x128xf32>
    %32 = arith.addf %31, %23 : vector<8x128xf32>
    %cst_13 = arith.constant 1.000000e+00 : f32
    %33 = vector.broadcast %cst_13 : f32 to vector<8x128xf32>
    %34 = arith.divf %33, %32 : vector<8x128xf32>
    %cst_14 = arith.constant 0.000000e+00 : f32
    %35 = vector.broadcast %cst_14 : f32 to vector<8x128xf32>
    %36 = arith.cmpf oge, %17, %35 : vector<8x128xf32>
    %37 = arith.mulf %23, %34 : vector<8x128xf32>
    %38 = arith.select %36, %34, %37 : vector<8x128xi1>, vector<8x128xf32>
    %cst_15 = arith.constant 1.000000e+00 : f32
    %39 = vector.broadcast %cst_15 : f32 to vector<8x128xf32>
    %40 = arith.subf %39, %38 : vector<8x128xf32>
    %41 = arith.select %19, %38, %40 : vector<8x128xi1>, vector<8x128xf32>
    %cst_16 = arith.constant 7.500000e-01 : f32
    %cst_17 = arith.constant 2.500000e-01 : f32
    %42 = vector.broadcast %cst_16 : f32 to vector<8x128xf32>
    %43 = vector.broadcast %cst_17 : f32 to vector<8x128xf32>
    %44 = arith.select %19, %42, %43 : vector<8x128xi1>, vector<8x128xf32>
    %cst_18 = arith.constant 1.000000e+00 : f32
    %45 = vector.broadcast %cst_18 : f32 to vector<8x128xf32>
    %46 = arith.subf %45, %41 : vector<8x128xf32>
    %47 = arith.mulf %46, %46 : vector<8x128xf32>
    %48 = arith.mulf %44, %47 : vector<8x128xf32>
    %49 = arith.mulf %48, %30 : vector<8x128xf32>
    %cst_19 = arith.constant 0.000000e+00 : f32
    %50 = vector.broadcast %cst_19 : f32 to vector<8x128xf32>
    %51 = arith.select %14, %49, %50 : vector<8x128xi1>, vector<8x128xf32>
    %52 = arith.addf %15, %51 : vector<8x128xf32>
    %c0_20 = arith.constant 0 : index
    %c0_21 = arith.constant 0 : index
    %53 = vector.load %arg5[%c0_20, %c0_21] : memref<8x128xf32, #tpu.memory_space<vmem>>, vector<8x128xf32>
    tpu.vector_store %arg5[%c0_20, %c0_21], %52 {strides = array<i32>} : memref<8x128xf32, #tpu.memory_space<vmem>>, vector<8x128xf32>,
    %c0_22 = arith.constant 0 : index
    %c0_23 = arith.constant 0 : index
    %54 = vector.load %arg5[%c0_22, %c0_23] : memref<8x128xf32, #tpu.memory_space<vmem>>, vector<8x128xf32>
    %c0_24 = arith.constant 0 : index
    %c1 = arith.constant 1 : index
    %c0_25 = arith.constant 0 : index
    %c0_26 = arith.constant 0 : index
    %55 = vector.load %arg2[%c0_24, %c1, %c0_25, %c0_26] : memref<1x4x8x128xf32, #tpu.memory_space<vmem>>, vector<1x1x8x128xf32>
    %56 = vector.shape_cast %55 : vector<1x1x8x128xf32> to vector<8x128xf32>
    %c1_i32 = arith.constant 1 : i32
    %57 = vector.broadcast %c1_i32 : i32 to vector<8x128xi32>
    %58 = arith.cmpi eq, %4, %57 : vector<8x128xi32>
    %59 = math.absf %56 : vector<8x128xf32>
    %cst_27 = arith.constant 0.000000e+00 : f32
    %60 = vector.broadcast %cst_27 : f32 to vector<8x128xf32>
    %61 = arith.subf %60, %59 : vector<8x128xf32>
    %62 = math.exp %61 : vector<8x128xf32>
    %63 = math.log1p %62 : vector<8x128xf32>
    %cst_28 = arith.constant 0.000000e+00 : f32
    %64 = vector.broadcast %cst_28 : f32 to vector<8x128xf32>
    %65 = arith.maximumf %56, %64 : vector<8x128xf32>
    %cst_29 = arith.constant 0.000000e+00 : f32
    %66 = vector.broadcast %cst_29 : f32 to vector<8x128xf32>
    %67 = arith.select %58, %56, %66 : vector<8x128xi1>, vector<8x128xf32>
    %68 = arith.subf %65, %67 : vector<8x128xf32>
    %69 = arith.addf %68, %63 : vector<8x128xf32>
    %cst_30 = arith.constant 1.000000e+00 : f32
    %70 = vector.broadcast %cst_30 : f32 to vector<8x128xf32>
    %71 = arith.addf %70, %62 : vector<8x128xf32>
    %cst_31 = arith.constant 1.000000e+00 : f32
    %72 = vector.broadcast %cst_31 : f32 to vector<8x128xf32>
    %73 = arith.divf %72, %71 : vector<8x128xf32>
    %cst_32 = arith.constant 0.000000e+00 : f32
    %74 = vector.broadcast %cst_32 : f32 to vector<8x128xf32>
    %75 = arith.cmpf oge, %56, %74 : vector<8x128xf32>
    %76 = arith.mulf %62, %73 : vector<8x128xf32>
    %77 = arith.select %75, %73, %76 : vector<8x128xi1>, vector<8x128xf32>
    %cst_33 = arith.constant 1.000000e+00 : f32
    %78 = vector.broadcast %cst_33 : f32 to vector<8x128xf32>
    %79 = arith.subf %78, %77 : vector<8x128xf32>
    %80 = arith.select %58, %77, %79 : vector<8x128xi1>, vector<8x128xf32>
    %cst_34 = arith.constant 7.500000e-01 : f32
    %cst_35 = arith.constant 2.500000e-01 : f32
    %81 = vector.broadcast %cst_34 : f32 to vector<8x128xf32>
    %82 = vector.broadcast %cst_35 : f32 to vector<8x128xf32>
    %83 = arith.select %58, %81, %82 : vector<8x128xi1>, vector<8x128xf32>
    %cst_36 = arith.constant 1.000000e+00 : f32
    %84 = vector.broadcast %cst_36 : f32 to vector<8x128xf32>
    %85 = arith.subf %84, %80 : vector<8x128xf32>
    %86 = arith.mulf %85, %85 : vector<8x128xf32>
    %87 = arith.mulf %83, %86 : vector<8x128xf32>
    %88 = arith.mulf %87, %69 : vector<8x128xf32>
    %cst_37 = arith.constant 0.000000e+00 : f32
    %89 = vector.broadcast %cst_37 : f32 to vector<8x128xf32>
    %90 = arith.select %14, %88, %89 : vector<8x128xi1>, vector<8x128xf32>
    %91 = arith.addf %54, %90 : vector<8x128xf32>
    %c0_38 = arith.constant 0 : index
    %c0_39 = arith.constant 0 : index
    %92 = vector.load %arg5[%c0_38, %c0_39] : memref<8x128xf32, #tpu.memory_space<vmem>>, vector<8x128xf32>
    tpu.vector_store %arg5[%c0_38, %c0_39], %91 {strides = array<i32>} : memref<8x128xf32, #tpu.memory_space<vmem>>, vector<8x128xf32>,
    %c0_40 = arith.constant 0 : index
    %c0_41 = arith.constant 0 : index
    %93 = vector.load %arg5[%c0_40, %c0_41] : memref<8x128xf32, #tpu.memory_space<vmem>>, vector<8x128xf32>
    %c0_42 = arith.constant 0 : index
    %c2 = arith.constant 2 : index
    %c0_43 = arith.constant 0 : index
    %c0_44 = arith.constant 0 : index
    %94 = vector.load %arg2[%c0_42, %c2, %c0_43, %c0_44] : memref<1x4x8x128xf32, #tpu.memory_space<vmem>>, vector<1x1x8x128xf32>
    %95 = vector.shape_cast %94 : vector<1x1x8x128xf32> to vector<8x128xf32>
    %c2_i32 = arith.constant 2 : i32
    %96 = vector.broadcast %c2_i32 : i32 to vector<8x128xi32>
    %97 = arith.cmpi eq, %4, %96 : vector<8x128xi32>
    %98 = math.absf %95 : vector<8x128xf32>
    %cst_45 = arith.constant 0.000000e+00 : f32
    %99 = vector.broadcast %cst_45 : f32 to vector<8x128xf32>
    %100 = arith.subf %99, %98 : vector<8x128xf32>
    %101 = math.exp %100 : vector<8x128xf32>
    %102 = math.log1p %101 : vector<8x128xf32>
    %cst_46 = arith.constant 0.000000e+00 : f32
    %103 = vector.broadcast %cst_46 : f32 to vector<8x128xf32>
    %104 = arith.maximumf %95, %103 : vector<8x128xf32>
    %cst_47 = arith.constant 0.000000e+00 : f32
    %105 = vector.broadcast %cst_47 : f32 to vector<8x128xf32>
    %106 = arith.select %97, %95, %105 : vector<8x128xi1>, vector<8x128xf32>
    %107 = arith.subf %104, %106 : vector<8x128xf32>
    %108 = arith.addf %107, %102 : vector<8x128xf32>
    %cst_48 = arith.constant 1.000000e+00 : f32
    %109 = vector.broadcast %cst_48 : f32 to vector<8x128xf32>
    %110 = arith.addf %109, %101 : vector<8x128xf32>
    %cst_49 = arith.constant 1.000000e+00 : f32
    %111 = vector.broadcast %cst_49 : f32 to vector<8x128xf32>
    %112 = arith.divf %111, %110 : vector<8x128xf32>
    %cst_50 = arith.constant 0.000000e+00 : f32
    %113 = vector.broadcast %cst_50 : f32 to vector<8x128xf32>
    %114 = arith.cmpf oge, %95, %113 : vector<8x128xf32>
    %115 = arith.mulf %101, %112 : vector<8x128xf32>
    %116 = arith.select %114, %112, %115 : vector<8x128xi1>, vector<8x128xf32>
    %cst_51 = arith.constant 1.000000e+00 : f32
    %117 = vector.broadcast %cst_51 : f32 to vector<8x128xf32>
    %118 = arith.subf %117, %116 : vector<8x128xf32>
    %119 = arith.select %97, %116, %118 : vector<8x128xi1>, vector<8x128xf32>
    %cst_52 = arith.constant 7.500000e-01 : f32
    %cst_53 = arith.constant 2.500000e-01 : f32
    %120 = vector.broadcast %cst_52 : f32 to vector<8x128xf32>
    %121 = vector.broadcast %cst_53 : f32 to vector<8x128xf32>
    %122 = arith.select %97, %120, %121 : vector<8x128xi1>, vector<8x128xf32>
    %cst_54 = arith.constant 1.000000e+00 : f32
    %123 = vector.broadcast %cst_54 : f32 to vector<8x128xf32>
    %124 = arith.subf %123, %119 : vector<8x128xf32>
    %125 = arith.mulf %124, %124 : vector<8x128xf32>
    %126 = arith.mulf %122, %125 : vector<8x128xf32>
    %127 = arith.mulf %126, %108 : vector<8x128xf32>
    %cst_55 = arith.constant 0.000000e+00 : f32
    %128 = vector.broadcast %cst_55 : f32 to vector<8x128xf32>
    %129 = arith.select %14, %127, %128 : vector<8x128xi1>, vector<8x128xf32>
    %130 = arith.addf %93, %129 : vector<8x128xf32>
    %c0_56 = arith.constant 0 : index
    %c0_57 = arith.constant 0 : index
    %131 = vector.load %arg5[%c0_56, %c0_57] : memref<8x128xf32, #tpu.memory_space<vmem>>, vector<8x128xf32>
    tpu.vector_store %arg5[%c0_56, %c0_57], %130 {strides = array<i32>} : memref<8x128xf32, #tpu.memory_space<vmem>>, vector<8x128xf32>,
    %c0_58 = arith.constant 0 : index
    %c0_59 = arith.constant 0 : index
    %132 = vector.load %arg5[%c0_58, %c0_59] : memref<8x128xf32, #tpu.memory_space<vmem>>, vector<8x128xf32>
    %c0_60 = arith.constant 0 : index
    %c3 = arith.constant 3 : index
    %c0_61 = arith.constant 0 : index
    %c0_62 = arith.constant 0 : index
    %133 = vector.load %arg2[%c0_60, %c3, %c0_61, %c0_62] : memref<1x4x8x128xf32, #tpu.memory_space<vmem>>, vector<1x1x8x128xf32>
    %134 = vector.shape_cast %133 : vector<1x1x8x128xf32> to vector<8x128xf32>
    %c3_i32 = arith.constant 3 : i32
    %135 = vector.broadcast %c3_i32 : i32 to vector<8x128xi32>
    %136 = arith.cmpi eq, %4, %135 : vector<8x128xi32>
    %137 = math.absf %134 : vector<8x128xf32>
    %cst_63 = arith.constant 0.000000e+00 : f32
    %138 = vector.broadcast %cst_63 : f32 to vector<8x128xf32>
    %139 = arith.subf %138, %137 : vector<8x128xf32>
    %140 = math.exp %139 : vector<8x128xf32>
    %141 = math.log1p %140 : vector<8x128xf32>
    %cst_64 = arith.constant 0.000000e+00 : f32
    %142 = vector.broadcast %cst_64 : f32 to vector<8x128xf32>
    %143 = arith.maximumf %134, %142 : vector<8x128xf32>
    %cst_65 = arith.constant 0.000000e+00 : f32
    %144 = vector.broadcast %cst_65 : f32 to vector<8x128xf32>
    %145 = arith.select %136, %134, %144 : vector<8x128xi1>, vector<8x128xf32>
    %146 = arith.subf %143, %145 : vector<8x128xf32>
    %147 = arith.addf %146, %141 : vector<8x128xf32>
    %cst_66 = arith.constant 1.000000e+00 : f32
    %148 = vector.broadcast %cst_66 : f32 to vector<8x128xf32>
    %149 = arith.addf %148, %140 : vector<8x128xf32>
    %cst_67 = arith.constant 1.000000e+00 : f32
    %150 = vector.broadcast %cst_67 : f32 to vector<8x128xf32>
    %151 = arith.divf %150, %149 : vector<8x128xf32>
    %cst_68 = arith.constant 0.000000e+00 : f32
    %152 = vector.broadcast %cst_68 : f32 to vector<8x128xf32>
    %153 = arith.cmpf oge, %134, %152 : vector<8x128xf32>
    %154 = arith.mulf %140, %151 : vector<8x128xf32>
    %155 = arith.select %153, %151, %154 : vector<8x128xi1>, vector<8x128xf32>
    %cst_69 = arith.constant 1.000000e+00 : f32
    %156 = vector.broadcast %cst_69 : f32 to vector<8x128xf32>
    %157 = arith.subf %156, %155 : vector<8x128xf32>
    %158 = arith.select %136, %155, %157 : vector<8x128xi1>, vector<8x128xf32>
    %cst_70 = arith.constant 7.500000e-01 : f32
    %cst_71 = arith.constant 2.500000e-01 : f32
    %159 = vector.broadcast %cst_70 : f32 to vector<8x128xf32>
    %160 = vector.broadcast %cst_71 : f32 to vector<8x128xf32>
    %161 = arith.select %136, %159, %160 : vector<8x128xi1>, vector<8x128xf32>
    %cst_72 = arith.constant 1.000000e+00 : f32
    %162 = vector.broadcast %cst_72 : f32 to vector<8x128xf32>
    %163 = arith.subf %162, %158 : vector<8x128xf32>
    %164 = arith.mulf %163, %163 : vector<8x128xf32>
    %165 = arith.mulf %161, %164 : vector<8x128xf32>
    %166 = arith.mulf %165, %147 : vector<8x128xf32>
    %cst_73 = arith.constant 0.000000e+00 : f32
    %167 = vector.broadcast %cst_73 : f32 to vector<8x128xf32>
    %168 = arith.select %14, %166, %167 : vector<8x128xi1>, vector<8x128xf32>
    %169 = arith.addf %132, %168 : vector<8x128xf32>
    %c0_74 = arith.constant 0 : index
    %c0_75 = arith.constant 0 : index
    %170 = vector.load %arg5[%c0_74, %c0_75] : memref<8x128xf32, #tpu.memory_space<vmem>>, vector<8x128xf32>
    tpu.vector_store %arg5[%c0_74, %c0_75], %169 {strides = array<i32>} : memref<8x128xf32, #tpu.memory_space<vmem>>, vector<8x128xf32>,
    %c0_i32_76 = arith.constant 0 : i32
    %171 = arith.cmpi eq, %arg1, %c0_i32_76 : i32
    %172 = arith.extui %171 : i1 to i32
    %c0_i32_77 = arith.constant 0 : i32
    %173 = arith.cmpi ne, %172, %c0_i32_77 : i32
    scf.if %173 {
      %c0_78 = arith.constant 0 : index
      %c0_79 = arith.constant 0 : index
      %174 = vector.load %arg5[%c0_78, %c0_79] : memref<8x128xf32, #tpu.memory_space<vmem>>, vector<8x128xf32>
      %175 = vector.shape_cast %174 : vector<8x128xf32> to vector<1x8x128xf32>
      %cst_80 = arith.constant dense<0.000000e+00> : vector<8x128xf32>
      %176 = vector.multi_reduction <add>, %175, %cst_80 [0] : vector<1x8x128xf32> to vector<8x128xf32>
      %c0_81 = arith.constant 0 : index
      %c0_82 = arith.constant 0 : index
      %c0_83 = arith.constant 0 : index
      %177 = vector.load %arg4[%c0_81, %c0_82, %c0_83] : memref<1x8x128xf32, #tpu.memory_space<vmem>>, vector<1x8x128xf32>
      %178 = vector.shape_cast %177 : vector<1x8x128xf32> to vector<8x128xf32>
      %179 = vector.shape_cast %176 : vector<8x128xf32> to vector<1x8x128xf32>
      tpu.vector_store %arg4[%c0_81, %c0_82, %c0_83], %179 {strides = array<i32>} : memref<1x8x128xf32, #tpu.memory_space<vmem>>, vector<1x8x128xf32>,
    } else {
    }
    return
  }
  func.func @transform_0(%arg0: i32, %arg1: i32) -> (i32, i32, i32, i32) {
    %c0_i32 = arith.constant 0 : i32
    %c0_i32_0 = arith.constant 0 : i32
    %c0_i32_1 = arith.constant 0 : i32
    return %arg0, %c0_i32, %arg1, %c0_i32_0 : i32, i32, i32, i32
  }
  func.func @transform_1(%arg0: i32, %arg1: i32) -> (i32, i32, i32) {
    %c0_i32 = arith.constant 0 : i32
    %c0_i32_0 = arith.constant 0 : i32
    return %arg0, %arg1, %c0_i32 : i32, i32, i32
  }
  func.func @transform_2(%arg0: i32, %arg1: i32) -> (i32, i32, i32) {
    %c0_i32 = arith.constant 0 : i32
    %c0_i32_0 = arith.constant 0 : i32
    %c0_i32_1 = arith.constant 0 : i32
    return %arg0, %c0_i32, %c0_i32_0 : i32, i32, i32
  }
}

</mosaic_0001>

<bundles_post_ra>
// kernel: tpu_custom_call.1
= control target key start
LH: loop header
LB: loop body
LE: loop exit
PB: predicated region body
PF: predicated region fallthrough
CT: control target
= control target key end

     0   :  { %7 = vsyncpa [#allocation4], 0  ;;  %s1192_s0 = inlined_call_operand.hbm [shape: f32[2,4,8,128], index: 0, kind: input, shape index: {}]   ;;  %s1193_s1 = inlined_call_operand.hbm [shape: s32[2,8,128], index: 1, kind: input, shape index: {}]   ;;  %s1194_s2 = inlined_call_operand.hbm [shape: f32[2,8,128], index: 2, kind: output, shape index: {}]  }
   0x1   :  { %9 = vsyncpa [#allocation4 + $0x1], 0 }
   0x2   :  { %10 = vsyncpa [#allocation7], 0 }
   0x3   :  { %12 = vsyncpa [#allocation7 + $0x1], 0 }
   0x4   :  { %13 = vsyncpa [#allocation5], 0 }
   0x5   :  { %15 = vsyncpa [#allocation5 + $0x1], 0  ;;  %s843_s9 = smov 0   ;;  %s845_s10 = smov 0  }
   0x6   :  { %s847_s11 = smov 0   ;;  %s849_s12 = smov 0  }
   0x7   :  { %s851_s13 = smov 0   ;;  %s853_s14 = smov 0  }
   0x8 LB: > { %s562_s15 = sadd.s32 4294967295, %s823_s14   ;;  %s563_s16 = sadd.s32 4294967294, %s823_s14   ;;  %s823_s14 = sphi %s853_s14, %s21_s14   ;;  %s819_s13 = sphi %s851_s13, %s1222_s13   ;;  %s815_s12 = sphi %s849_s12, %s1221_s12   ;;  %s811_s11 = sphi %s847_s11, %s1220_s11   ;;  %s807_s10 = sphi %s845_s10, %s1219_s10   ;;  %s803_s9 = sphi %s843_s9, %s1218_s9  }
   0x9   : > { %s33_s17 = sadd.s32 1, %s819_s13  ;;  %s42_s18 = sadd.s32 1, %s811_s11 }
   0xa   : > { %p35_p0 = scmp.ge.s32.totalorder %s33_s17, 2  ;;  %p49_p1 = scmp.ne.s32.totalorder %s811_s11, %s807_s10 }
   0xb   : > { %p50_p2 = scmp.eq.s32.totalorder %s823_s14, 0  ;;  %p55_p3 = scmp.ne.s32.totalorder %s807_s10, %s803_s9 }
   0xc   : > { %s1224_s17 = smov (%p35_p0, %s33_s17), 0  ;;  %p56_p5 = scmp.eq.s32.totalorder %s562_s15, 0 }
   0xd   : > { %p884_p4 = por %p50_p2, %p49_p1  ;;  %s37_s20 = ssub.s32 %s819_s13, %s1224_s17 }
   0xe   : > { %p107_p6 = scmp.eq.s32.totalorder %s562_s15, 1  ;;  %p40_p7 = scmp.eq.s32.totalorder %s37_s20, 0 }
   0xf   : > { %p890_p8 = por %p56_p5, %p55_p3  ;;  %p113_p10 = scmp.eq.s32.totalorder %s563_s16, 1 }
  0x10   : > { %p894_p9 = por %p107_p6, %p49_p1  ;;  %p565_p12 = scmp.ge.s32.totalorder %s823_s14, 2 }
  0x11   : > { %s899_s23 = scalar_select %p40_p7, %s811_s11, %s42_s18  }
  0x12   : > { %p901_p11 = por %p113_p10, %p55_p3  ;;  %p600_p13 = scmp.lt.s32.totalorder %s823_s14, 2 }
  0x13   : > { %s133_s25 = sand.u32 1, %s811_s11   ;;  %s582_s27 = sshll.u32 %s819_s13, 5 }
  0x14   : > { %s566_s26 = sshll.u32 %s133_s25, 5  ;;  %s143_s30 = scalar_lea.hbm %s1192_s0, %s582_s27 }
  0x15   : > { %s137_s3 = scalar_lea.vmem [#allocation3], %s566_s26  ;;  %s144_s5 = sshll.u32 %s143_s30, 4  ;;  %s145_s5 = int_to_ptr.hbm [resolvable:$true] %s144_s5 }
  0x16   : > { %s146_s4 = sshll.u32 %s137_s3, 4  ;;  %p914_p0 = pnand %p600_p13, %p884_p4  ;;  %s147_s4 = int_to_ptr.vmem [resolvable:$true] %s146_s4 }
  0x17   : > { %p571_p1 = scmp.ge.s32.totalorder %s823_s14, 1  ;;  %s134_s7 = scalar_lea.sflag [#allocation4], %s133_s25 }
  0x18   : > { %s825_s8 = smov 128   ;;  %s826_s15 = smov 8  }
  0x19   : > { %592 = dma.hbm_to_vmem [thread:$0]  (!%p914_p0), %s145_s5, 512, %s147_s4, %s134_s7, %s825_s8, %s825_s8, %s826_s15  }
  0x1a   : > { %p174_p2 = scmp.lt.s32.totalorder %s823_s14, 3  ;;  %s569_s16 = sshll.u32 %s133_s25, 3 }
  0x1b   : > { %s570_s18 = sshll.u32 %s819_s13, 3  ;;  %s160_s27 = scalar_lea.vmem [#allocation6], %s569_s16 }
  0x1c   : > { %p175_p3 = pnand %p571_p1, %p174_p2  ;;  %s165_s19 = scalar_lea.hbm %s1193_s1, %s570_s18 }
  0x1d   : > { %s169_s28 = sshll.u32 %s160_s27, 4  ;;  %s167_s29 = sshll.u32 %s165_s19, 4  ;;  %s170_s28 = int_to_ptr.vmem [resolvable:$true] %s169_s28  ;;  %s168_s29 = int_to_ptr.hbm [resolvable:$true] %s167_s29 }
  0x1e   : > { %s157_s30 = scalar_lea.sflag [#allocation7], %s133_s25  ;;  %178 = sbr.rel (%p175_p3) target bundleno = 104 (0x68), region = 28 }
  0x1f   : > { %595 = dma.hbm_to_vmem [thread:$0]  (!%p914_p0), %s168_s29, 128, %s170_s28, %s157_s30  }
  0x20   : > { %s929_s3 = sand.u32 (!%p175_p3), 1, %s807_s10  }
  0x21   : > { %s572_s4 = sshll.u32 (!%p175_p3), %s929_s3, 5  ;;  %s181_s5 = scalar_lea.sflag (!%p175_p3), [#allocation4], %s929_s3 }
  0x22   : > { %s184_s7 = scalar_lea.vmem (!%p175_p3), [#allocation3], %s572_s4 }
  0x23   : > { %790 = dma.done.wait (%p890_p8), %s181_s5, 512  }
  0x24   : > { %792 = vsyncadd (%p890_p8), %s181_s5, 4294966784  ;;  %s573_s25 = sshll.u32 %s929_s3, 3  ;;  %s191_s6 = scalar_lea.sflag [#allocation7], %s929_s3 }
  0x25   : > { %s194_s8 = scalar_lea.vmem [#allocation6], %s573_s25 }
  0x26   : > { %794 = dma.done.wait (%p890_p8), %s191_s6, 128  }
  0x27   : > { %796 = vsyncadd (%p890_p8), %s191_s6, 4294967168  ;;  %v945_v0 = vld [vmem:[%s184_s7] sm:$0xff]  ;;  %v947_v1 = vld [vmem:[%s184_s7 + $0x8] sm:$0xff]  ;;  %v227_v16 = vlaneseq  ;;  %v827_v36 = vmov 0.25   ;;  %s579_s21 = sshll.u32 %s815_s12, 3  ;;  %s220_s12 = scalar_lea.vmem [#allocation8], %s573_s25 }
  0x28   : > { %v240_v2 = vand.u32 2147483647, %v945_v0  ;;  %v950_v3 = vld [vmem:[%s184_s7 + $0x10] sm:$0xff]  ;;  %v290_v4 = vand.u32 2147483647, %v947_v1  ;;  %v954_v10 = vld [vmem:[%s184_s7 + $0x18] sm:$0xff]  ;;  %s453_s18 = scalar_lea.hbm %s1194_s2, %s579_s21 }
  0x29   : > { %v340_v5 = vand.u32 2147483647, %v950_v3  ;;  %v390_v13 = vand.u32 2147483647, %v954_v10  ;;  %v961_v18 = vld [vmem:[%s194_s8] sm:$0xff]  ;;  %v969_v23 = vshrl.u32 %v227_v16, 7 }
  0x2a   : > { %v241_v6 = vsub.f32 0.0, %v240_v2  ;;  %v291_v7 = vsub.f32 0.0, %v290_v4  ;;  %vm239_vm0 = vcmp.eq.s32.totalorder %v961_v18, 0  ;;  %v253_v25 = vmax.f32 %v945_v0, 0.0  ;;  %s455_s20 = sshll.u32 %s220_s12, 4  ;;  %s457_s26 = sshll.u32 %s453_s18, 4  ;;  %s456_s20 = int_to_ptr.vmem [resolvable:$true] %s455_s20  ;;  %s458_s26 = int_to_ptr.hbm [resolvable:$true] %s457_s26 }
  0x2b   : > { %v341_v8 = vsub.f32 0.0, %v340_v5  ;;  %v391_v14 = vsub.f32 0.0, %v390_v13  ;;  %v254_v26 = vsel %vm239_vm0, %v945_v0, 0.0  ;;  %vm289_vm1 = vcmp.eq.s32.totalorder %v961_v18, 1  ;;  %s443_s19 = scalar_lea.sflag [#allocation5], %s929_s3  ;;  %s751_s27 = sshra.s32 %s458_s26, 4  ;;  %s752_s27 = int_to_ptr.hbm [resolvable:$true] %s751_s27 }
  0x2c   : > { %v242_v9 = vmul.f32 1.442695, %v241_v6  ;;  %v292_v11 = vmul.f32 1.442695, %v291_v7  ;;  %v303_v27 = vmax.f32 %v947_v1, 0.0  ;;  %v304_v29 = vsel %vm289_vm1, %v947_v1, 0.0  ;;  %p758_p7 = scmp.lt.s32.totalorder %s752_s27, %s1194_s2 }
  0x2d   : > { %v342_v12 = vmul.f32 1.442695, %v341_v8  ;;  %v392_v21 = vmul.f32 1.442695, %v391_v14  ;;  %v987_v31 = vand.u32 127, %v227_v16  ;;  %v234_v32 = vmul.u32 128, %v969_v23 }
  0x2e   : > { %653 = vpow2.f32 %v242_v9  ;;  %v991_v35 = vsub.f32 %v253_v25, %v254_v26  ;;  %v996_v37 = vsel %vm239_vm0, 0.75, %v827_v36  ;;  %v998_v41 = vsub.f32 %v303_v27, %v304_v29  ;;  %s753_s28 = scalar_lea.hbm %s752_s27, 8  ;;  %s757_s4 = scalar_lea.hbm %s1194_s2, 16 }
  0x2f   : > { %655 = vpow2.f32 %v292_v11  ;;  %v353_v44 = vmax.f32 %v950_v3, 0.0  ;;  %vm273_vm3 = vcmp.ge.f32.partialorder %v945_v0, 0.0  ;;  %vm339_vm6 = vcmp.eq.s32.totalorder %v961_v18, 2  ;;  %p754_p4 = scmp.ne.s32.totalorder %s752_s27, %s753_s28  ;;  %p759_p8 = scmp.lt.s32.totalorder %s757_s4, %s753_s28 }
  0x30   : > { %657 = vpow2.f32 %v342_v12  ;;  %vm323_vm9 = vcmp.ge.f32.partialorder %v947_v1, 0.0  ;;  %vm373_vm15 = vcmp.ge.f32.partialorder %v950_v3, 0.0 }
  0x31   : > { %p755_p5 = pnand %p754_p4, %p894_p9  ;;  %p760_p10 = por %p759_p8, %p758_p7 }
  0x33   : > { %p756_p6 = pneg %p755_p5 }
  0x34   : > { %v957_v15 = vpop.eup %653 }
  0x35   : > { %v959_v17 = vpop.eup %655  ;;  %v244_v19 = vadd.f32 1.0, %v957_v15  ;;  %v247_v24 = vmul.f32 -0.5, %v957_v15  ;;  %v250_v34 = vand.u32 2147483647, %v957_v15  ;;  %p761_p13 = pnand %p760_p10, %p756_p6 }
  0x36   : > { %v965_v20 = vadd.f32 1.0, %v959_v17  ;;  %v967_v22 = vpop.eup %657  ;;  %v297_v28 = vmul.f32 -0.5, %v959_v17  ;;  %v300_v46 = vand.u32 2147483647, %v959_v17 }
  0x37   : > { %659 = vrcp.f32 %v244_v19  ;;  %v985_v30 = vadd.f32 1.0, %v967_v22  ;;  %v248_v33 = vadd.f32 1.0, %v247_v24  ;;  %v267_v39 = vand.u32 2147483647, %v244_v19 }
  0x38   : > { %661 = vrcp.f32 %v965_v20  ;;  %v269_v40 = vand.u32 2147483648, %v244_v19  ;;  %v298_v43 = vadd.f32 1.0, %v297_v28  ;;  %vm263_vm2 = vweird.f32 %v244_v19 }
  0x39   : > { %663 = vpow2.f32 %v392_v21  ;;  %v317_v47 = vand.u32 2147483647, %v965_v20  ;;  %v1009_v49 = vmul.f32 %v957_v15, %v248_v33  ;;  %vm1011_vm4 = vcmp.lt.f32.partialorder %v250_v34, 0.0004427343 }
  0x3a   : > { %665 = vrcp.f32 %v985_v30  ;;  %vm1017_vm7 = vcmp.eq.f32.partialorder %v267_v39, 8.507059e+37  ;;  %v270_v54 = vor.u32 1.1754944e-38, %v269_v40  ;;  %vm313_vm8 = vweird.f32 %v965_v20 }
  0x3b   : > { %667 = vlog2.f32 %v244_v19  ;;  %v319_v55 = vand.u32 2147483648, %v965_v20  ;;  %v1025_v57 = vmul.f32 %v959_v17, %v298_v43  ;;  %vm1032_vm12 = vcmp.eq.f32.partialorder %v317_v47, 8.507059e+37 }
  0x3c   : > { %669 = vlog2.f32 %v965_v20  ;;  %v347_v62 = vmul.f32 -0.5, %v967_v22  ;;  %v350_v63 = vand.u32 2147483647, %v967_v22  ;;  %vm363_vm14 = vweird.f32 %v985_v30 }
  0x3d   : > { %v660_v38 = vpop.eup %659  ;;  %671 = vlog2.f32 %v985_v30  ;;  %v320_v11 = vor.u32 1.1754944e-38, %v319_v55  ;;  %v367_v12 = vand.u32 2147483647, %v985_v30  ;;  %v369_v13 = vand.u32 2147483648, %v985_v30 }
  0x3e   : > { %v259_v42 = vmul.f32 %v660_v38, %v244_v19  ;;  %v662_v45 = vpop.eup %661  ;;  %vm264_vm5 = vweird.f32 %v660_v38  ;;  %v348_v24 = vadd.f32 1.0, %v347_v62  ;;  %v354_v34 = vsel %vm339_vm6, %v950_v3, 0.0 }
  0x3f   : > { %v1006_v48 = vpop.eup %663  ;;  %v309_v52 = vmul.f32 %v662_v45, %v965_v20  ;;  %vm314_vm10 = vweird.f32 %v662_v45  ;;  %vm1028_vm11 = vmor %vm263_vm2, %vm264_vm5  ;;  %vm1061_vm5 = vcmp.lt.f32.partialorder %v300_v46, 0.0004427343 }
  0x40   : > { %v260_v51 = vsub.f32 1.0, %v259_v42  ;;  %v666_v59 = vpop.eup %665  ;;  %v1039_v2 = vadd.f32 1.0, %v1006_v48  ;;  %vm1045_vm13 = vmor %vm313_vm8, %vm314_vm10  ;;  %vm368_vm8 = vcmp.eq.f32.partialorder %v367_v12, 8.507059e+37  ;;  %vm1083_vm10 = vcmp.lt.f32.partialorder %v350_v63, 0.0004427343 }
  0x41   : > { %v310_v58 = vsub.f32 1.0, %v309_v52  ;;  %v668_v4 = vpop.eup %667  ;;  %v359_v7 = vmul.f32 %v666_v59, %v985_v30  ;;  %vm364_vm2 = vweird.f32 %v666_v59  ;;  %v349_v30 = vmul.f32 %v967_v22, %v348_v24 }
  0x42   : > { %v261_v56 = vmul.f32 %v660_v38, %v260_v51  ;;  %v670_v8 = vpop.eup %669  ;;  %v246_v20 = vmul.f32 0.6931472, %v668_v4  ;;  %673 = vrcp.f32 %v1039_v2  ;;  %v355_v4 = vsub.f32 %v353_v44, %v354_v34 }
  0x43   : > { %v311_v6 = vmul.f32 %v662_v45, %v310_v58  ;;  %v360_v19 = vsub.f32 1.0, %v359_v7  ;;  %v296_v26 = vmul.f32 0.6931472, %v670_v8  ;;  %v672_v39 = vpop.eup %671  ;;  %675 = vlog2.f32 %v1039_v2 }
  0x44   : > { %v262_v5 = vadd.f32 %v660_v38, %v261_v56  ;;  %v346_v53 = vmul.f32 0.6931472, %v672_v39  ;;  %v417_v58 = vand.u32 2147483647, %v1039_v2 }
  0x45   : > { %v312_v16 = vadd.f32 %v662_v45, %v311_v6  ;;  %v361_v28 = vmul.f32 %v666_v59, %v360_v19  ;;  %v302_v0 = vsel %vm1061_vm5, %v1025_v57, %v296_v26  ;;  %v397_v6 = vmul.f32 -0.5, %v1006_v48 }
  0x46   : > { %v266_v14 = vsel %vm1028_vm11, %v660_v38, %v262_v5  ;;  %v370_v38 = vor.u32 1.1754944e-38, %v369_v13  ;;  %v306_v9 = vadd.f32 %v998_v41, %v302_v0  ;;  %v352_v13 = vsel %vm1083_vm10, %v349_v30, %v346_v53 }
  0x47   : > { %v271_v21 = vsel %vm1017_vm7, %v270_v54, %v266_v14  ;;  %v316_v27 = vsel %vm1045_vm13, %v662_v45, %v312_v16  ;;  %vm1072_vm7 = vmor %vm363_vm14, %vm364_vm2  ;;  %v362_v43 = vadd.f32 %v666_v59, %v361_v28  ;;  %v252_v45 = vsel %vm1011_vm4, %v1009_v49, %v246_v20 }
  0x48   : > { %v274_v25 = vmul.f32 %v957_v15, %v271_v21  ;;  %v321_v33 = vsel %vm1032_vm12, %v320_v11, %v316_v27  ;;  %v674_v49 = vpop.eup %673  ;;  %v256_v8 = vadd.f32 %v991_v35, %v252_v45  ;;  %v235_v20 = vadd.s32 %v234_v32, %v987_v31 }
  0x49   : > { %v324_v42 = vmul.f32 %v959_v17, %v321_v33  ;;  %v366_v51 = vsel %vm1072_vm7, %v666_v59, %v362_v43  ;;  %v409_v57 = vmul.f32 %v674_v49, %v1039_v2  ;;  %vm414_vm4 = vweird.f32 %v674_v49  ;;  %v676_v7 = vpop.eup %675 }
  0x4a   : > { %v275_v40 = vsel %vm273_vm3, %v271_v21, %v274_v25  ;;  %v371_v54 = vsel %vm368_vm8, %v370_v38, %v366_v51  ;;  %vm413_vm3 = vweird.f32 %v1039_v2  ;;  %v419_v59 = vand.u32 2147483648, %v1039_v2 }
  0x4b   : > { %v276_v46 = vsub.f32 1.0, %v275_v40  ;;  %v325_v17 = vsel %vm323_vm9, %v321_v33, %v324_v42  ;;  %v374_v56 = vmul.f32 %v967_v22, %v371_v54  ;;  %v410_v63 = vsub.f32 1.0, %v409_v57 }
  0x4c   : > { %v326_v52 = vsub.f32 1.0, %v325_v17  ;;  %v328_v22 = vsel %vm289_vm1, 0.75, %v827_v36  ;;  %v420_v44 = vor.u32 1.1754944e-38, %v419_v59  ;;  %v378_v21 = vsel %vm339_vm6, 0.75, %v827_v36 }
  0x4d   : > { %v277_v50 = vsel %vm239_vm0, %v275_v40, %v276_v46  ;;  %v375_v62 = vsel %vm373_vm15, %v371_v54, %v374_v56  ;;  %v411_v12 = vmul.f32 %v674_v49, %v410_v63  ;;  %vm1121_vm0 = vmor %vm413_vm3, %vm414_vm4  ;;  %v398_v2 = vadd.f32 1.0, %v397_v6 }
  0x4e   : > { %v279_v55 = vsub.f32 1.0, %v277_v50  ;;  %v327_v1 = vsel %vm289_vm1, %v325_v17, %v326_v52  ;;  %v376_v5 = vsub.f32 1.0, %v375_v62  ;;  %vm418_vm1 = vcmp.eq.f32.partialorder %v417_v58, 8.507059e+37 }
  0x4f   : > { %v329_v61 = vsub.f32 1.0, %v327_v1  ;;  %v412_v19 = vadd.f32 %v674_v49, %v411_v12  ;;  %vm389_vm9 = vcmp.eq.s32.totalorder %v961_v18, 3  ;;  %v400_v25 = vand.u32 2147483647, %v1006_v48 }
  0x50   : > { %v280_v60 = vmul.f32 %v279_v55, %v279_v55  ;;  %v377_v14 = vsel %vm339_vm6, %v375_v62, %v376_v5  ;;  %v356_v26 = vadd.f32 %v355_v4, %v352_v13  ;;  %v403_v27 = vmax.f32 %v954_v10, 0.0 }
  0x51   : > { %v330_v11 = vmul.f32 %v329_v61, %v329_v61  ;;  %v379_v16 = vsub.f32 1.0, %v377_v14  ;;  %vm423_vm11 = vcmp.ge.f32.partialorder %v954_v10, 0.0  ;;  %vm236_vm6 = vcmp.lt.s32.totalorder %v235_v20, 256 }
  0x52   : > { %v281_v35 = vmul.f32 %v280_v60, %v996_v37  ;;  %v416_v37 = vsel %vm1121_vm0, %v674_v49, %v412_v19  ;;  %v396_v33 = vmul.f32 0.6931472, %v676_v7  ;;  %v399_v34 = vmul.f32 %v1006_v48, %v398_v2 }
  0x53   : > { %v331_v41 = vmul.f32 %v330_v11, %v328_v22  ;;  %v380_v24 = vmul.f32 %v379_v16, %v379_v16  ;;  %v421_v28 = vsel %vm418_vm1, %v420_v44, %v416_v37  ;;  %v404_v15 = vsel %vm389_vm9, %v954_v10, 0.0 }
  0x54   : > { %v282_v23 = vmul.f32 %v281_v35, %v256_v8  ;;  %v424_v29 = vmul.f32 %v1006_v48, %v421_v28  ;;  %vm401_vm12 = vcmp.lt.f32.partialorder %v400_v25, 0.0004427343  ;;  %v405_v45 = vsub.f32 %v403_v27, %v404_v15 }
  0x55   : > { %v332_v31 = vmul.f32 %v331_v41, %v306_v9  ;;  %v381_v32 = vmul.f32 %v380_v24, %v378_v21  ;;  %v402_v46 = vsel %vm401_vm12, %v399_v34, %v396_v33  ;;  %v428_v10 = vsel %vm389_vm9, 0.75, %v827_v36 }
  0x56   : > { %v425_v38 = vsel %vm423_vm11, %v421_v28, %v424_v29  ;;  %v283_v40 = vsel %vm236_vm6, %v282_v23, 0.0  ;;  %v406_v17 = vadd.f32 %v405_v45, %v402_v46 }
  0x57   : > { %v426_v39 = vsub.f32 1.0, %v425_v38  ;;  %v333_v42 = vsel %vm236_vm6, %v332_v31, 0.0  ;;  %v382_v43 = vmul.f32 %v381_v32, %v356_v26 }
  0x58   : > { %v334_v48 = vadd.f32 %v333_v42, %v283_v40 }
  0x59   : > { %v427_v30 = vsel %vm389_vm9, %v425_v38, %v426_v39  ;;  %v383_v0 = vsel %vm236_vm6, %v382_v43, 0.0 }
  0x5a   : > { %v429_v47 = vsub.f32 1.0, %v427_v30  ;;  %v384_v50 = vadd.f32 %v383_v0, %v334_v48 }
  0x5c   : > { %v430_v51 = vmul.f32 %v429_v47, %v429_v47 }
  0x5e   : > { %v431_v49 = vmul.f32 %v430_v51, %v428_v10 }
  0x60   : > { %v432_v52 = vmul.f32 %v431_v49, %v406_v17 }
  0x62   : > { %v433_v18 = vsel %vm236_vm6, %v432_v52, 0.0 }
  0x63   : > { %v434_v36 = vadd.f32 %v433_v18, %v384_v50 }
  0x65   : > { %441 = vst [vmem:[%s220_s12] sm:$0xff] %v434_v36 }
  0x66   : > { %764 = shalt.err (!%p761_p13)
}
  0x67   : > { %587 = dma.vmem_to_hbm [thread:$0]  (%p894_p9), %s456_s20, 128, %s458_s26, %s443_s19  }
  0x68 PF: > { %s469_s3 = sand.u32 1, %s803_s9   ;;  %p597_p0 = pnand %p565_p12, %p901_p11 }
  0x69   : > { %s470_s25 = scalar_lea.sflag [#allocation5], %s469_s3 }
  0x6a   : > { %p598_p1 = pneg %p597_p0 }
  0x6c   : > { %798 = dma.done.wait (%p598_p1), %s470_s25, 128  }
  0x6d   : > { %800 = vsyncadd (%p598_p1), %s470_s25, 4294967168  ;;  %s21_s14 = sadd.s32 1, %s823_s14   ;;  %s1218_s9 = smov %s807_s10 }
  0x6e   : > { %p18_p2 = scmp.ge.s32.totalorder %s21_s14, 4   ;;  %s1219_s10 = smov %s811_s11 }
  0x6f   : > { %s1220_s11 = smov %s899_s23  ;;  %s1221_s12 = smov %s819_s13 }
  0x70   : > { %s1222_s13 = smov %s1224_s17  ;;  %20 = sbr.rel (!%p18_p2) target bundleno = 8 (0x8), region = 97 }
  0x75   :  { %476 = vsyncpa [#allocation4], 1 }
  0x76   :  { %478 = vsyncpa [#allocation4 + $0x1], 1 }
  0x77   :  { %479 = vsyncpa [#allocation7], 1 }
  0x78   :  { %481 = vsyncpa [#allocation7 + $0x1], 1 }
  0x79   :  { %482 = vsyncpa [#allocation5], 1 }
  0x7a   :  { %484 = vsyncpa [#allocation5 + $0x1], 1 }

</bundles_post_ra>
